<compile_context>
chip_gen: v7x
topology: tpu7x:2x2x1
jax: 0.10.0
libtpu: 0.0.40
codegen_flags: <defaults>
</compile_context>

<pallas_src>
import jax
import jax.numpy as jnp
from jax.experimental import pallas as pl
from jax.experimental.pallas import tpu as pltpu


def _swish_kernel(x_ref, o_ref):
    x = x_ref[...]
    # f32 math: the upcast is VPU-cheap and the kernel is mem-bound; it keeps
    # v5e (no bf16 VPU/EUP) on a safe path and bf16 inputs fully accurate.
    xf = x.astype(jnp.float32)
    # x * sigmoid(x) == 0.5 * x * (1 + tanh(x/2)): exactly one EUP
    # transcendental per element and no true divide on the VPU, so compute
    # stays hidden under the HBM stream on every generation.
    o_ref[...] = (0.5 * xf * (jnp.tanh(0.5 * xf) + 1.0)).astype(o_ref.dtype)


# ~8 MiB blocks: per-grid-step overhead (~0.35 us) drops to ~2-6% of a step's
# HBM time on v5e/v6e/v7x.  4x block (double-buffered in+out) = 32 MiB, which
# sits comfortably under the 48 MiB scoped-VMEM request below (< v7x's 64 MiB
# per-TC VMEM, with headroom for compiler scratch).
_TARGET_BLOCK_BYTES = 8 * 1024 * 1024
_VMEM_LIMIT_BYTES = 48 * 1024 * 1024

_WIDTH_CANDIDATES = (4096, 2048, 1024, 512, 256, 128)


def _swish_2d(x2d, tile_rows, *, inplace=False):
    rows, width = x2d.shape
    grid = (pl.cdiv(rows, tile_rows),)
    return pl.pallas_call(
        _swish_kernel,
        out_shape=jax.ShapeDtypeStruct((rows, width), x2d.dtype),
        grid_spec=pltpu.PrefetchScalarGridSpec(
            num_scalar_prefetch=0,
            grid=grid,
            in_specs=[pl.BlockSpec((tile_rows, width), lambda i: (i, 0))],
            out_specs=pl.BlockSpec((tile_rows, width), lambda i: (i, 0)),
        ),
        # In-place only when the caller donates its input; otherwise XLA would
        # insert a defensive copy and add a full HBM pass.
        input_output_aliases={0: 0} if inplace else {},
        compiler_params=pltpu.CompilerParams(
            # Row axis is embarrassingly parallel; on v7x (2 TCs/chip) switch
            # to pltpu.CORE_PARALLEL if xprof shows one TensorCore idle —
            # "parallel" is kept here as the portable, known-safe setting.
            dimension_semantics=("parallel",),
            vmem_limit_bytes=_VMEM_LIMIT_BYTES,
            # Let the flatten / slice view fuse into the custom call so the
            # ragged-path slice never materializes an extra input copy.
            allow_input_fusion=[True],
        ),
    )(x2d)


def swish(x, *, inplace=False):
    """Elementwise Swish; same forward semantics as the PyTorch module (any shape).

    Set inplace=True only when the caller donates `x` (e.g. via jit donation);
    then the pallas_call aliases its output onto the input buffer, halving the
    peak HBM footprint for large activations.
    """
    orig_shape = x.shape
    dtype = x.dtype
    n = x.size
    if n == 0:
        return x

    x_flat = x.reshape(-1)
    itemsize = jnp.dtype(dtype).itemsize
    # Sublane alignment for the block's second-to-last dim (8 f32 / 16 bf16 / 32 i8).
    sub_align = max(8, 32 // itemsize)

    # Widest lane-dense last dim that exactly divides the flat size (no padding copies).
    width = None
    for cand in _WIDTH_CANDIDATES:
        if n % cand == 0:
            width = cand
            break

    if width is not None:
        bulk, tail = n, 0
    else:
        width = 512
        bulk = (n // width) * width
        tail = n - bulk

    pieces = []
    if bulk > 0:
        rows = bulk // width
        tr = max(1, _TARGET_BLOCK_BYTES // (width * itemsize))
        if rows <= tr:
            tile_rows = rows                       # single block == full array dims
        else:
            tile_rows = max(sub_align, (tr // sub_align) * sub_align)
        y_bulk = _swish_2d(
            x_flat[:bulk].reshape(rows, width),
            tile_rows,
            inplace=inplace and tail == 0,
        )
        pieces.append(y_bulk.reshape(-1))
    if tail > 0:
        # Ragged tail (< width elements, only when n % 128 != 0): negligible
        # compute in plain JAX.  allow_input_fusion keeps the bulk input path
        # copy-free; the final concatenate is the remaining extra output pass.
        # TODO(synk): fold the ragged tail into the kernel (masked last block)
        # to remove the concatenate pass for n % 128 != 0 shapes.
        xt = x_flat[bulk:].astype(jnp.float32)
        pieces.append((0.5 * xt * (jnp.tanh(0.5 * xt) + 1.0)).astype(dtype))

    out_flat = pieces[0] if len(pieces) == 1 else jnp.concatenate(pieces)
    return out_flat.reshape(orig_shape)


if __name__ == "__main__":
    key = jax.random.PRNGKey(0)
    # NCHW input, same convention as the PyTorch module's forward.
    x = jax.random.normal(key, (2, 4, 16, 16), dtype=jnp.float32)

    y = jax.jit(swish)(x)
    jax.block_until_ready(y)

    # Reference check against pure-JAX swish (f32 tolerance; tanh-form sigmoid
    # differs from jax.nn.sigmoid only at the ULP level).
    y_ref = x * jax.nn.sigmoid(x)
    assert y.shape == x.shape and y.dtype == x.dtype
    assert jnp.max(jnp.abs(y - y_ref)) < 1e-5

    print("KERNEL_OK")
</pallas_src>

<mosaic_0001>
module attributes {stable_mosaic.version = 11 : i64} {
  func.func @_swish_kernel(%arg0: i32, %arg1: memref<1x2048xf32, #tpu.memory_space<vmem>>, %arg2: memref<1x2048xf32, #tpu.memory_space<vmem>>) attributes {dimension_semantics = [#tpu.dimension_semantics<parallel>], iteration_bounds = array<i64: 1>, scalar_prefetch = 0 : i64, scratch_operands = 0 : i64, tpu.core_type = #tpu.core_type<tc>, window_params = [{transform_indices = @transform_0, window_bounds = array<i64: 1, 2048>}, {transform_indices = @transform_1, window_bounds = array<i64: 1, 2048>}]} {
    %c0 = arith.constant 0 : index
    %c0_0 = arith.constant 0 : index
    %0 = vector.load %arg1[%c0, %c0_0] : memref<1x2048xf32, #tpu.memory_space<vmem>>, vector<1x2048xf32>
    %cst = arith.constant 5.000000e-01 : f32
    %1 = vector.broadcast %cst : f32 to vector<1x2048xf32>
    %2 = arith.mulf %1, %0 : vector<1x2048xf32>
    %cst_1 = arith.constant 5.000000e-01 : f32
    %3 = vector.broadcast %cst_1 : f32 to vector<1x2048xf32>
    %4 = arith.mulf %3, %0 : vector<1x2048xf32>
    %5 = math.tanh %4 : vector<1x2048xf32>
    %cst_2 = arith.constant 1.000000e+00 : f32
    %6 = vector.broadcast %cst_2 : f32 to vector<1x2048xf32>
    %7 = arith.addf %5, %6 : vector<1x2048xf32>
    %8 = arith.mulf %2, %7 : vector<1x2048xf32>
    %c0_3 = arith.constant 0 : index
    %c0_4 = arith.constant 0 : index
    %9 = vector.load %arg2[%c0_3, %c0_4] : memref<1x2048xf32, #tpu.memory_space<vmem>>, vector<1x2048xf32>
    tpu.vector_store %arg2[%c0_3, %c0_4], %8 {strides = array<i32>} : memref<1x2048xf32, #tpu.memory_space<vmem>>, vector<1x2048xf32>,
    return
  }
  func.func @transform_0(%arg0: i32) -> (i32, i32) {
    %c0_i32 = arith.constant 0 : i32
    %c0_i32_0 = arith.constant 0 : i32
    return %arg0, %c0_i32 : i32, i32
  }
  func.func @transform_1(%arg0: i32) -> (i32, i32) {
    %c0_i32 = arith.constant 0 : i32
    %c0_i32_0 = arith.constant 0 : i32
    return %arg0, %c0_i32 : i32, i32
  }
}

</mosaic_0001>

<bundles_post_ra>
// kernel: swish.1
= control target key start
LH: loop header
LB: loop body
LE: loop exit
PB: predicated region body
PF: predicated region fallthrough
CT: control target
= control target key end

     0   :  { %s50_s0 = inlined_call_operand.vmem [shape: f32[1,2048], index: 0, kind: input, shape index: {}]   ;;  %s51_s1 = inlined_call_operand.vmem [shape: f32[1,2048], index: 1, kind: output, shape index: {}]  }
   0x1   :  { %v8_v0 = vld [vmem:[%s50_s0] sm:$0xff]  ;;  %v9_v1 = vld [vmem:[%s50_s0 + $0x8] sm:$0xff] }
   0x2   :  { %v10_v2 = vmul.f32 0.5, %v8_v0  ;;  %v11_v3 = vmul.f32 0.5, %v9_v1 }
   0x4   :  { %24 = vtanh.f32 %v10_v2 }
   0x5   :  { %26 = vtanh.f32 %v11_v3 }
   0xe   :  { %v25_v4 = vpop.eup %24 }
   0xf   :  { %v27_v5 = vpop.eup %26  ;;  %v14_v6 = vadd.f32 1.0, %v25_v4 }
  0x10   :  { %v15_v7 = vadd.f32 1.0, %v27_v5 }
  0x11   :  { %v16_v8 = vmul.f32 %v14_v6, %v10_v2 }
  0x12   :  { %v17_v9 = vmul.f32 %v15_v7, %v11_v3 }
  0x13   :  { %18 = vst [vmem:[%s51_s1] sm:$0xff] %v16_v8 }
  0x14   :  { %19 = vst [vmem:[%s51_s1 + $0x8] sm:$0xff] %v17_v9 }

</bundles_post_ra>
